<compile_context>
chip_gen: v7x
topology: tpu7x:2x2x1
jax: 0.10.0
libtpu: 0.0.40
codegen_flags: <defaults>
</compile_context>

<pallas_src>
import functools

import jax
import jax.numpy as jnp
from jax.experimental import pallas as pl
from jax.experimental.pallas import tpu as pltpu


# ---------------------------------------------------------------------------
# Hardware / budget helpers
# ---------------------------------------------------------------------------

def _round_up(a, b):
    return ((a + b - 1) // b) * b


def _vmem_capacity_bytes():
    try:
        return int(pltpu.get_tpu_info().vmem_capacity_bytes)
    except Exception:
        return 64 << 20  # conservative (v7x-sized) fallback


def _vmem_budgets():
    """(vmem_limit_bytes for CompilerParams, byte budget for resident tiles)."""
    cap = _vmem_capacity_bytes()
    if cap >= (100 << 20):           # v5e / v6e: 128 MiB physical
        vmem_limit = 100 << 20
    else:                            # v7x: 64 MiB physical
        vmem_limit = min(cap - (8 << 20), 56 << 20)
    vmem_limit = max(vmem_limit, 32 << 20)
    tile_budget = vmem_limit - (4 << 20)   # headroom for compiler scratch
    return vmem_limit, tile_budget


def _num_tensorcores():
    cores = 1
    try:
        info = pltpu.get_tpu_info()
        for attr in ("num_cores", "num_tensorcores", "tensorcores_per_chip",
                     "num_cores_per_chip", "cores_per_chip"):
            v = getattr(info, attr, None)
            if isinstance(v, int) and v > 0:
                cores = v
                break
    except Exception:
        pass
    return max(1, min(cores, 2))


def _pick_tm(T, D):
    """Token-tile size: large on 128 MiB parts (weight-stream roofline),
    moderate on v7x; for small T, one tile per TensorCore."""
    del D
    cap = _vmem_capacity_bytes()
    cores = _num_tensorcores()
    tm_target = 512 if cap >= (100 << 20) else 256
    if T >= tm_target * cores:
        return tm_target
    per_core = _round_up(max(1, -(-T // cores)), 8)   # sublane multiple of 8
    return max(8, min(tm_target, per_core))


def _pick_block_h(H, D, tm_hint, in_itemsize=4, out_itemsize=4):
    """Largest lane-aligned divisor of H whose double-buffered weight tiles fit
    the VMEM byte budget (bf16: 12*D*block_h bytes per H-step, double-buffered)."""
    _, tile_budget = _vmem_budgets()
    act_bytes = 2 * tm_hint * D * in_itemsize + 2 * tm_hint * D * max(out_itemsize, 4)
    weight_budget = max(tile_budget - act_bytes, 12 * D * 128)
    bh_max = max(128, weight_budget // (12 * D))
    best = None
    cand = 128
    while cand <= min(H, 2048):
        if H % cand == 0 and cand <= bh_max:
            best = cand
        cand += 128
    if best is None:
        best = H   # H < 128 or not a multiple of 128: take the full dim
    return int(best)


# ---------------------------------------------------------------------------
# Weight preparation (one-time, outside jit)
# ---------------------------------------------------------------------------

def prepare_ffn_weights(w1, w2, w3, block_h=None, *, tm_hint=None):
    """w1, w3: (H, D); w2: (D, H) in PyTorch nn.Linear (out, in) layout.

    Returns:
      w13:  (n_h, D, 2*block_h) bf16 — per-k CONTIGUOUS slab [w1^T tile_k | w3^T tile_k]
      w2t:  (H, D) bf16
      block_h
    """
    H, D = w1.shape
    if tm_hint is None:
        tm_hint = 512 if _vmem_capacity_bytes() >= (100 << 20) else 256
    if block_h is None:
        block_h = _pick_block_h(H, D, tm_hint)
    assert H % block_h == 0, (H, block_h)
    n_h = H // block_h

    w1t = jnp.transpose(w1).reshape(D, n_h, block_h)   # (D, n_h, bh)
    w3t = jnp.transpose(w3).reshape(D, n_h, block_h)
    w13 = jnp.concatenate([w1t, w3t], axis=-1)          # (D, n_h, 2*bh)
    w13 = jnp.transpose(w13, (1, 0, 2))                 # (n_h, D, 2*bh) contiguous slabs
    w2t = jnp.transpose(w2)                              # (H, D) — already contiguous per k

    return (w13.astype(jnp.bfloat16), w2t.astype(jnp.bfloat16), int(block_h))


# ---------------------------------------------------------------------------
# Kernels
# ---------------------------------------------------------------------------

def _ffn_kernel_acc_in_out(x_ref, w13_ref, w2_ref, o_ref, *, block_h):
    # f32 output doubles as the accumulator: the out index_map is k-invariant,
    # so o_ref is resident across the reduction axis.  Saves the f32 scratch.
    k = pl.program_id(1)

    @pl.when(k == 0)
    def _():
        o_ref[...] = jnp.zeros_like(o_ref)

    x = x_ref[...].astype(jnp.bfloat16)                 # cast in-kernel
    h13 = jnp.dot(x, w13_ref[0], preferred_element_type=jnp.float32)
    h1 = h13[:, :block_h]
    h3 = h13[:, block_h:]
    # SiLU gate in f32 (VPU + EUP); elementwise in H, exact per H-tile.
    gated = (h1 * jax.nn.sigmoid(h1)) * h3
    # TODO(synk): on v7x at the VMEM ceiling, split into separate w1/w3 dots to
    # drop the (tm, 2*block_h) fused intermediate.
    o_ref[...] += jnp.dot(gated.astype(jnp.bfloat16), w2_ref[...],
                          preferred_element_type=jnp.float32)


def _ffn_kernel_scratch_acc(x_ref, w13_ref, w2_ref, o_ref, acc_ref, *, block_h):
    # Non-f32 output: keep an f32 VMEM scratch accumulator.
    k = pl.program_id(1)

    @pl.when(k == 0)
    def _():
        acc_ref[...] = jnp.zeros_like(acc_ref)

    x = x_ref[...].astype(jnp.bfloat16)
    h13 = jnp.dot(x, w13_ref[0], preferred_element_type=jnp.float32)
    h1 = h13[:, :block_h]
    h3 = h13[:, block_h:]
    gated = (h1 * jax.nn.sigmoid(h1)) * h3
    acc_ref[...] += jnp.dot(gated.astype(jnp.bfloat16), w2_ref[...],
                            preferred_element_type=jnp.float32)

    @pl.when(k == pl.num_programs(1) - 1)
    def _():
        o_ref[...] = acc_ref[...].astype(o_ref.dtype)


# ---------------------------------------------------------------------------
# Wrapper
# ---------------------------------------------------------------------------

@functools.partial(jax.jit, static_argnames=("block_h", "tm"))
def _feed_forward_jit(x, w13, w2t, *, block_h, tm):
    B, S, D = x.shape
    H = w2t.shape[0]
    n_h = H // block_h
    assert w13.shape == (n_h, D, 2 * block_h), (w13.shape, n_h, D, block_h)
    assert w2t.shape == (H, D)

    T = B * S
    n_t = -(-T // tm)
    T_pad = n_t * tm

    x2d = x.reshape(T, D)                 # no wrapper-side dtype cast
    if T_pad != T:
        x2d = jnp.pad(x2d, ((0, T_pad - T), (0, 0)))

    out_dtype = x.dtype
    acc_in_out = jnp.dtype(out_dtype) == jnp.dtype(jnp.float32)

    # --- VMEM budgeting / pipelining depth ---
    vmem_limit, tile_budget = _vmem_budgets()
    w13_tile = D * 2 * block_h * 2        # bf16 bytes per H-step
    w2_tile = block_h * D * 2
    act_bytes = (2 * tm * D * x2d.dtype.itemsize
                 + 2 * tm * D * jnp.dtype(out_dtype).itemsize)
    if not acc_in_out:
        act_bytes += tm * D * 4
    weight_bufs = 2
    if n_t == 1 and n_h >= 3 and 3 * (w13_tile + w2_tile) + act_bytes <= tile_budget:
        weight_bufs = 3                   # decode: hide weight-DMA latency deeper

    def _wspec(shape, index_map):
        if weight_bufs > 2:
            return pl.BlockSpec(shape, index_map, pipeline_mode=pl.Buffered(weight_bufs))
        return pl.BlockSpec(shape, index_map)

    in_specs = [
        pl.BlockSpec((tm, D), lambda i, k: (i, 0)),                  # x tile (k-invariant)
        _wspec((1, D, 2 * block_h), lambda i, k: (k, 0, 0)),         # contiguous [w1|w3]^T slab k
        _wspec((block_h, D), lambda i, k: (k, 0)),                   # w2^T tile k
    ]
    out_specs = pl.BlockSpec((tm, D), lambda i, k: (i, 0))

    if acc_in_out:
        kernel = functools.partial(_ffn_kernel_acc_in_out, block_h=block_h)
        scratch = []
    else:
        kernel = functools.partial(_ffn_kernel_scratch_acc, block_h=block_h)
        scratch = [pltpu.VMEM((tm, D), jnp.float32)]

    cost = pl.CostEstimate(
        flops=6 * T_pad * D * H,
        transcendentals=T_pad * H,
        bytes_accessed=(T_pad * D * x2d.dtype.itemsize
                        + T_pad * D * jnp.dtype(out_dtype).itemsize
                        + n_t * (w13.size * 2 + w2t.size * 2)),
    )

    out2d = pl.pallas_call(
        kernel,
        out_shape=jax.ShapeDtypeStruct((T_pad, D), out_dtype),
        grid_spec=pltpu.PrefetchScalarGridSpec(
            num_scalar_prefetch=0,
            grid=(n_t, n_h),                              # reduction axis last
            in_specs=in_specs,
            out_specs=out_specs,
            scratch_shapes=scratch,
        ),
        compiler_params=pltpu.CompilerParams(
            dimension_semantics=("parallel", "arbitrary"),
            vmem_limit_bytes=int(vmem_limit),
        ),
        cost_estimate=cost,
    )(x2d, w13, w2t)

    return out2d[:T].reshape(B, S, D)


def feed_forward(x, w13, w2t, *, block_h, tm=None):
    """x: (B, S, D) f32/bf16; w13: (n_h, D, 2*block_h) bf16; w2t: (H, D) bf16."""
    if tm is None:
        B, S, D = x.shape
        tm = _pick_tm(B * S, D)
    return _feed_forward_jit(x, w13, w2t, block_h=int(block_h), tm=int(tm))


# ---------------------------------------------------------------------------
# Reference + demo
# ---------------------------------------------------------------------------

def _reference(x, w1, w2, w3):
    h1 = jnp.einsum("bsd,hd->bsh", x, w1)
    h3 = jnp.einsum("bsd,hd->bsh", x, w3)
    g = (h1 * jax.nn.sigmoid(h1)) * h3
    return jnp.einsum("bsh,dh->bsd", g, w2)


if __name__ == "__main__":
    # Module hyperparameters (small but TPU-tile friendly).
    dim = 128
    hidden_dim_arg = 256
    multiple_of = 128
    # Mirror the PyTorch __init__ hidden_dim computation exactly.
    hidden_dim = int(2 * hidden_dim_arg / 3)
    hidden_dim = multiple_of * ((hidden_dim + multiple_of - 1) // multiple_of)

    batch, seq = 2, 8

    key = jax.random.PRNGKey(0)
    kx, k1, k2, k3 = jax.random.split(key, 4)
    x = jax.random.normal(kx, (batch, seq, dim), dtype=jnp.float32)
    # nn.Linear weights in PyTorch (out_features, in_features) layout.
    w1 = jax.random.normal(k1, (hidden_dim, dim), dtype=jnp.float32) * 0.02
    w2 = jax.random.normal(k2, (dim, hidden_dim), dtype=jnp.float32) * 0.02
    w3 = jax.random.normal(k3, (hidden_dim, dim), dtype=jnp.float32) * 0.02

    # One-time weight preparation, outside the jitted call.
    w13, w2t, block_h = prepare_ffn_weights(w1, w2, w3)

    out = feed_forward(x, w13, w2t, block_h=block_h)
    out = jax.block_until_ready(out)

    ref = _reference(x, w1, w2, w3)
    assert out.shape == (batch, seq, dim)
    # bf16 matmuls vs f32 reference: bound max error relative to output scale.
    max_err = float(jnp.max(jnp.abs(out - ref)))
    ref_scale = float(jnp.max(jnp.abs(ref)))
    assert max_err <= 0.05 * ref_scale + 1e-4, (max_err, ref_scale)

    print("KERNEL_OK")
</pallas_src>

<mosaic_0001>
module attributes {stable_mosaic.version = 11 : i64} {
  func.func @_ffn_kernel_acc_in_out(%arg0: i32, %arg1: i32, %arg2: memref<16x128xf32, #tpu.memory_space<vmem>>, %arg3: memref<1x128x512xbf16, #tpu.memory_space<vmem>>, %arg4: memref<256x128xbf16, #tpu.memory_space<vmem>>, %arg5: memref<16x128xf32, #tpu.memory_space<vmem>>) attributes {dimension_semantics = [#tpu.dimension_semantics<parallel>, #tpu.dimension_semantics<arbitrary>], iteration_bounds = array<i64: 1, 1>, scalar_prefetch = 0 : i64, scratch_operands = 0 : i64, tpu.core_type = #tpu.core_type<tc>, window_params = [{transform_indices = @transform_0, window_bounds = array<i64: 16, 128>}, {transform_indices = @transform_1, window_bounds = array<i64: 1, 128, 512>}, {transform_indices = @transform_2, window_bounds = array<i64: 256, 128>}, {transform_indices = @transform_3, window_bounds = array<i64: 16, 128>}]} {
    %c0_i32 = arith.constant 0 : i32
    %0 = arith.cmpi eq, %arg1, %c0_i32 : i32
    %1 = arith.extui %0 : i1 to i32
    %c0_i32_0 = arith.constant 0 : i32
    %2 = arith.cmpi ne, %1, %c0_i32_0 : i32
    scf.if %2 {
      %cst_13 = arith.constant 0.000000e+00 : f32
      %23 = vector.broadcast %cst_13 : f32 to vector<16x128xf32>
      %c0_14 = arith.constant 0 : index
      %c0_15 = arith.constant 0 : index
      %24 = vector.load %arg5[%c0_14, %c0_15] : memref<16x128xf32, #tpu.memory_space<vmem>>, vector<16x128xf32>
      tpu.vector_store %arg5[%c0_14, %c0_15], %23 {strides = array<i32>} : memref<16x128xf32, #tpu.memory_space<vmem>>, vector<16x128xf32>,
    } else {
    }
    %c0 = arith.constant 0 : index
    %c0_1 = arith.constant 0 : index
    %3 = vector.load %arg2[%c0, %c0_1] : memref<16x128xf32, #tpu.memory_space<vmem>>, vector<16x128xf32>
    %4 = arith.truncf %3 : vector<16x128xf32> to vector<16x128xbf16>
    %c0_2 = arith.constant 0 : index
    %c0_3 = arith.constant 0 : index
    %c0_4 = arith.constant 0 : index
    %5 = vector.load %arg3[%c0_2, %c0_3, %c0_4] : memref<1x128x512xbf16, #tpu.memory_space<vmem>>, vector<1x128x512xbf16>
    %6 = vector.shape_cast %5 : vector<1x128x512xbf16> to vector<128x512xbf16>
    %cst = arith.constant dense<0.000000e+00> : vector<16x512xf32>
    %7 = tpu.matmul %4, %6, %cst {dimension_numbers = #tpu.dot_dimension_numbers<[1], [0], [0], [1], [0, 0, 1, 1], [], []>} : vector<16x128xbf16>, vector<128x512xbf16>, vector<16x512xf32> -> vector<16x512xf32>
    %8 = vector.extract_strided_slice %7 {offsets = [0, 0], sizes = [16, 256], strides = [1, 1]} : vector<16x512xf32> to vector<16x256xf32>
    %9 = vector.extract_strided_slice %7 {offsets = [0, 256], sizes = [16, 256], strides = [1, 1]} : vector<16x512xf32> to vector<16x256xf32>
    %10 = arith.negf %8 : vector<16x256xf32>
    %11 = math.exp %10 : vector<16x256xf32>
    %cst_5 = arith.constant 1.000000e+00 : f32
    %12 = vector.broadcast %cst_5 : f32 to vector<16x256xf32>
    %13 = arith.addf %12, %11 : vector<16x256xf32>
    %14 = arith.divf %12, %13 : vector<16x256xf32>
    %15 = arith.mulf %8, %14 : vector<16x256xf32>
    %16 = arith.mulf %15, %9 : vector<16x256xf32>
    %c0_6 = arith.constant 0 : index
    %c0_7 = arith.constant 0 : index
    %17 = vector.load %arg5[%c0_6, %c0_7] : memref<16x128xf32, #tpu.memory_space<vmem>>, vector<16x128xf32>
    %18 = arith.truncf %16 : vector<16x256xf32> to vector<16x256xbf16>
    %c0_8 = arith.constant 0 : index
    %c0_9 = arith.constant 0 : index
    %19 = vector.load %arg4[%c0_8, %c0_9] : memref<256x128xbf16, #tpu.memory_space<vmem>>, vector<256x128xbf16>
    %cst_10 = arith.constant dense<0.000000e+00> : vector<16x128xf32>
    %20 = tpu.matmul %18, %19, %cst_10 {dimension_numbers = #tpu.dot_dimension_numbers<[1], [0], [0], [1], [0, 0, 1, 1], [], []>} : vector<16x256xbf16>, vector<256x128xbf16>, vector<16x128xf32> -> vector<16x128xf32>
    %21 = arith.addf %17, %20 : vector<16x128xf32>
    %c0_11 = arith.constant 0 : index
    %c0_12 = arith.constant 0 : index
    %22 = vector.load %arg5[%c0_11, %c0_12] : memref<16x128xf32, #tpu.memory_space<vmem>>, vector<16x128xf32>
    tpu.vector_store %arg5[%c0_11, %c0_12], %21 {strides = array<i32>} : memref<16x128xf32, #tpu.memory_space<vmem>>, vector<16x128xf32>,
    return
  }
  func.func @transform_0(%arg0: i32, %arg1: i32) -> (i32, i32) {
    %c0_i32 = arith.constant 0 : i32
    %c0_i32_0 = arith.constant 0 : i32
    return %arg0, %c0_i32 : i32, i32
  }
  func.func @transform_1(%arg0: i32, %arg1: i32) -> (i32, i32, i32) {
    %c0_i32 = arith.constant 0 : i32
    %c0_i32_0 = arith.constant 0 : i32
    %c0_i32_1 = arith.constant 0 : i32
    return %arg1, %c0_i32, %c0_i32_0 : i32, i32, i32
  }
  func.func @transform_2(%arg0: i32, %arg1: i32) -> (i32, i32) {
    %c0_i32 = arith.constant 0 : i32
    %c0_i32_0 = arith.constant 0 : i32
    return %arg1, %c0_i32 : i32, i32
  }
  func.func @transform_3(%arg0: i32, %arg1: i32) -> (i32, i32) {
    %c0_i32 = arith.constant 0 : i32
    %c0_i32_0 = arith.constant 0 : i32
    return %arg0, %c0_i32 : i32, i32
  }
}

</mosaic_0001>

<bundles_post_ra>
// kernel: _feed_forward_jit.1
= control target key start
LH: loop header
LB: loop body
LE: loop exit
PB: predicated region body
PF: predicated region fallthrough
CT: control target
= control target key end

     0   :  { %8 = vsyncpa [#allocation3], 0  ;;  %s916_s0 = inlined_call_operand.hbm [shape: f32[16,128], index: 0, kind: input, shape index: {}]   ;;  %s917_s1 = inlined_call_operand.hbm [shape: bf16[1,128,512], index: 1, kind: input, shape index: {}]   ;;  %s918_s2 = inlined_call_operand.hbm [shape: bf16[256,128], index: 2, kind: input, shape index: {}]   ;;  %s919_s3 = inlined_call_operand.hbm [shape: f32[16,128], index: 3, kind: output, shape index: {}]  }
   0x1   :  { %9 = vsyncpa [#allocation6], 0 }
   0x2   :  { %10 = vsyncpa [#allocation4], 0  ;;  %s831_s12 = smov [#allocation5]   ;;  %s737_s16 = scalar_lea.hbm %s917_s1, 4096 }
   0x3   :  { %s28_s13 = sshll.u32 %s831_s12, 4  ;;  %p738_p0 = scmp.ne.s32.totalorder %s917_s1, %s737_s16  ;;  %s29_s13 = int_to_ptr.vmem [resolvable:$true] %s28_s13 }
   0x4   :  { %p741_p1 = scmp.lt.u32.totalorder %s737_s16, %s917_s1 }
   0x6   :  { %p743_p2 = pnand %p741_p1, %p738_p0 }
   0x8   :  { %746 = shalt.err (!%p743_p2)
}
   0x9   :  { %s747_s21 = scalar_lea.vmem %s29_s13, 4096  ;;  %p752_p4 = scmp.lt.s32.totalorder %s29_s13, %s29_s13 }
   0xa   :  { %p748_p3 = scmp.ne.s32.totalorder %s29_s13, %s747_s21  ;;  %p753_p5 = scmp.lt.s32.totalorder %s747_s21, %s747_s21 }
   0xc   :  { %p754_p6 = por %p753_p5, %p752_p4 }
   0xe   :  { %p755_p7 = pnand %p754_p6, %p748_p3 }
  0x10   :  { %758 = shalt.err (!%p755_p7)
}
  0x11   :  { %s832_s22 = smov 256   ;;  %s833_s23 = smov 16  }
  0x12   :  { %34 = dma.hbm_to_vmem [thread:$0]  %s917_s1, 4096, %s29_s13, [#allocation6], %s832_s22, %s832_s22, %s833_s23  }
  0x13   :  { %s834_s26 = smov [#allocation2]   ;;  %s759_s30 = scalar_lea.hbm %s916_s0, 256 }
  0x14   :  { %s16_s27 = sshll.u32 %s834_s26, 4  ;;  %p760_p8 = scmp.ne.s32.totalorder %s916_s0, %s759_s30  ;;  %s17_s27 = int_to_ptr.vmem [resolvable:$true] %s16_s27 }
  0x15   :  { %p763_p9 = scmp.lt.u32.totalorder %s759_s30, %s916_s0 }
  0x17   :  { %p765_p10 = pnand %p763_p9, %p760_p8 }
  0x19   :  { %768 = shalt.err (!%p765_p10)
}
  0x1a   :  { %s769_s8 = scalar_lea.vmem %s17_s27, 256  ;;  %p774_p12 = scmp.lt.s32.totalorder %s17_s27, %s17_s27 }
  0x1b   :  { %p770_p11 = scmp.ne.s32.totalorder %s17_s27, %s769_s8  ;;  %p775_p13 = scmp.lt.s32.totalorder %s769_s8, %s769_s8 }
  0x1d   :  { %p776_p0 = por %p775_p13, %p774_p12 }
  0x1f   :  { %p777_p1 = pnand %p776_p0, %p770_p11 }
  0x21   :  { %780 = shalt.err (!%p777_p1)
}
  0x22   :  { %s835_s1 = smov 128   ;;  %s836_s9 = smov 8  }
  0x23   :  { %22 = dma.hbm_to_vmem [thread:$0]  %s916_s0, 256, %s17_s27, [#allocation3], %s835_s1, %s835_s1, %s836_s9  }
  0x24   :  { %s837_s12 = smov [#allocation7]   ;;  %s781_s16 = scalar_lea.hbm %s918_s2, 2048 }
  0x25   :  { %s40_s13 = sshll.u32 %s837_s12, 4  ;;  %p782_p2 = scmp.ne.s32.totalorder %s918_s2, %s781_s16  ;;  %s41_s13 = int_to_ptr.vmem [resolvable:$true] %s40_s13 }
  0x26   :  { %p785_p3 = scmp.lt.u32.totalorder %s781_s16, %s918_s2 }
  0x28   :  { %p787_p4 = pnand %p785_p3, %p782_p2 }
  0x2a   :  { %790 = shalt.err (!%p787_p4)
}
  0x2b   :  { %s791_s21 = scalar_lea.vmem %s41_s13, 2048  ;;  %p796_p6 = scmp.lt.s32.totalorder %s41_s13, %s41_s13 }
  0x2c   :  { %p792_p5 = scmp.ne.s32.totalorder %s41_s13, %s791_s21  ;;  %p797_p7 = scmp.lt.s32.totalorder %s791_s21, %s791_s21 }
  0x2e   :  { %p798_p8 = por %p797_p7, %p796_p6 }
  0x30   :  { %p799_p9 = pnand %p798_p8, %p792_p5 }
  0x32   :  { %802 = shalt.err (!%p799_p9)
}
  0x33   :  { %s838_s0 = smov 64   ;;  %s839_s22 = smov 4  }
  0x34   :  { %46 = dma.hbm_to_vmem [thread:$0]  %s918_s2, 2048, %s41_s13, [#allocation6], %s838_s0, %s838_s0, %s839_s22  }
  0x35   :  { %825 = dma.done.wait [#allocation3], 256  }
  0x36   :  { %826 = vsyncadd [#allocation3], 4294967040 }
  0x37   :  { %827 = dma.done.wait [#allocation6], 6144  }
  0x38   :  { %828 = vsyncadd [#allocation6], 4294961152  ;;  %v840_v0 = vmov 0   ;;  %v657_v1 = vld [vmem:[#allocation5 + $0x4] ss:$16 sps:$4 sm:$0xff]   ;;  %v64_v29 = vld [vmem:[#allocation2 + $0x8] sm:$0xff] }
  0x39   :  { %290 = vmatprep.mubr.bf16.mxu0 %v840_v0  ;;  %333 = vmatprep.mubr.bf16.mxu1 %v840_v0  ;;  %v659_v2 = vld [vmem:[#allocation5] ss:$16 sps:$4 sm:$0xff]   ;;  %v660_v3 = vld [vmem:[#allocation5 + $0x24] ss:$16 sps:$4 sm:$0xff]   ;;  %v678_v8 = vld [vmem:[#allocation5 + $0xc] ss:$16 sps:$4 sm:$0xff]  }
  0x3a   :  { %258 = vmatprep.subr.bf16.mxu0 %v657_v1  ;;  %v662_v4 = vld [vmem:[#allocation5 + $0x20] ss:$16 sps:$4 sm:$0xff]   ;;  %v663_v5 = vld [vmem:[#allocation5 + $0x44] ss:$16 sps:$4 sm:$0xff]   ;;  %v680_v9 = vld [vmem:[#allocation5 + $0x8] ss:$16 sps:$4 sm:$0xff]   ;;  %301 = vmatprep.subr.bf16.mxu1 %v678_v8 }
  0x3b   :  { %259 = vmatpush1.bf16.msra.mxu0 %v659_v2  ;;  %v665_v6 = vld [vmem:[#allocation5 + $0x40] ss:$16 sps:$4 sm:$0xff]   ;;  %v666_v7 = vld [vmem:[#allocation5 + $0x64] ss:$16 sps:$4 sm:$0xff]   ;;  %v684_v12 = vld [vmem:[#allocation5 + $0x2c] ss:$16 sps:$4 sm:$0xff]   ;;  %302 = vmatpush1.bf16.msra.mxu1 %v680_v9 }
  0x3c   :  { %260 = vmatprep.subr.bf16.mxu0 %v660_v3  ;;  %v668_v10 = vld [vmem:[#allocation5 + $0x60] ss:$16 sps:$4 sm:$0xff]   ;;  %v669_v11 = vld [vmem:[#allocation5 + $0x84] ss:$16 sps:$4 sm:$0xff]   ;;  %v686_v13 = vld [vmem:[#allocation5 + $0x28] ss:$16 sps:$4 sm:$0xff]   ;;  %303 = vmatprep.subr.bf16.mxu1 %v684_v12 }
  0x3d   :  { %v687_v14 = vld [vmem:[#allocation5 + $0x4c] ss:$16 sps:$4 sm:$0xff]   ;;  %v671_v15 = vld [vmem:[#allocation5 + $0x80] ss:$16 sps:$4 sm:$0xff]   ;;  %v672_v16 = vld [vmem:[#allocation5 + $0xa4] ss:$16 sps:$4 sm:$0xff]  }
  0x3e   :  { %v689_v17 = vld [vmem:[#allocation5 + $0x48] ss:$16 sps:$4 sm:$0xff]   ;;  %v690_v18 = vld [vmem:[#allocation5 + $0x6c] ss:$16 sps:$4 sm:$0xff]   ;;  %v674_v19 = vld [vmem:[#allocation5 + $0xa0] ss:$16 sps:$4 sm:$0xff]  }
  0x3f   :  { %261 = vmatpush1.bf16.msra.mxu0 %v662_v4  ;;  %304 = vmatpush1.bf16.msra.mxu1 %v686_v13  ;;  %v675_v20 = vld [vmem:[#allocation5 + $0xc4] ss:$16 sps:$4 sm:$0xff]   ;;  %v677_v21 = vld [vmem:[#allocation5 + $0xc0] ss:$16 sps:$4 sm:$0xff]   ;;  %v692_v22 = vld [vmem:[#allocation5 + $0x68] ss:$16 sps:$4 sm:$0xff]  }
  0x40   :  { %262 = vmatprep.subr.bf16.mxu0 %v663_v5  ;;  %305 = vmatprep.subr.bf16.mxu1 %v687_v14  ;;  %v693_v23 = vld [vmem:[#allocation5 + $0x8c] ss:$16 sps:$4 sm:$0xff]   ;;  %v681_v24 = vld [vmem:[#allocation5 + $0xe4] ss:$16 sps:$4 sm:$0xff]   ;;  %v695_v25 = vld [vmem:[#allocation5 + $0x88] ss:$16 sps:$4 sm:$0xff]  }
  0x41   :  { %v696_v26 = vld [vmem:[#allocation5 + $0xac] ss:$16 sps:$4 sm:$0xff]   ;;  %v683_v27 = vld [vmem:[#allocation5 + $0xe0] ss:$16 sps:$4 sm:$0xff]   ;;  %v698_v30 = vld [vmem:[#allocation5 + $0xa8] ss:$16 sps:$4 sm:$0xff]  }
  0x42   :  { %v63_v28 = vld [vmem:[#allocation2] sm:$0xff]  ;;  %v699_v31 = vld [vmem:[#allocation5 + $0xcc] ss:$16 sps:$4 sm:$0xff]   ;;  %v701_v33 = vld [vmem:[#allocation5 + $0xc8] ss:$16 sps:$4 sm:$0xff]   ;;  %s841_s2 = smov [#allocation8]  }
  0x43   :  { %263 = vmatpush1.bf16.msra.mxu0 %v665_v6  ;;  %306 = vmatpush1.bf16.msra.mxu1 %v689_v17  ;;  %v65_v32 = vpack.c.bf16 %v64_v29, %v63_v28  ;;  %v702_v34 = vld [vmem:[#allocation5 + $0xec] ss:$16 sps:$4 sm:$0xff]   ;;  %v704_v35 = vld [vmem:[#allocation5 + $0xe8] ss:$16 sps:$4 sm:$0xff]   ;;  %v705_v36 = vld [vmem:[#allocation7 + $0x40] sm:$0xff]   ;;  %s558_s25 = sshll.u32 %s841_s2, 4  ;;  %s559_s25 = int_to_ptr.vmem [resolvable:$true] %s558_s25 }
  0x44   :  { %264 = vmatprep.subr.bf16.mxu0 %v666_v7  ;;  %307 = vmatprep.subr.bf16.mxu1 %v690_v18  ;;  %v706_v37 = vld [vmem:[#allocation7] sm:$0xff]   ;;  %v707_v38 = vld [vmem:[#allocation7 + $0x48] sm:$0xff]   ;;  %v709_v40 = vld [vmem:[#allocation7 + $0x50] sm:$0xff]   ;;  %s803_s26 = scalar_lea.vmem %s559_s25, 256  ;;  %p808_p11 = scmp.lt.s32.totalorder %s559_s25, %s559_s25 }
  0x45   :  { %v708_v39 = vld [vmem:[#allocation7 + $0x8] sm:$0xff]   ;;  %v710_v41 = vld [vmem:[#allocation7 + $0x10] sm:$0xff]   ;;  %v711_v42 = vld [vmem:[#allocation7 + $0x58] sm:$0xff]   ;;  %p804_p10 = scmp.ne.s32.totalorder %s559_s25, %s803_s26  ;;  %p809_p12 = scmp.lt.s32.totalorder %s803_s26, %s803_s26 }
  0x46   :  { %v712_v43 = vld [vmem:[#allocation7 + $0x18] sm:$0xff]   ;;  %v713_v44 = vld [vmem:[#allocation7 + $0x60] sm:$0xff]   ;;  %v715_v46 = vld [vmem:[#allocation7 + $0x68] sm:$0xff]  }
  0x47   :  { %265 = vmatpush1.bf16.msra.mxu0 %v668_v10  ;;  %308 = vmatpush1.bf16.msra.mxu1 %v692_v22  ;;  %v714_v45 = vld [vmem:[#allocation7 + $0x20] sm:$0xff]   ;;  %v716_v47 = vld [vmem:[#allocation7 + $0x28] sm:$0xff]   ;;  %v717_v48 = vld [vmem:[#allocation7 + $0x70] sm:$0xff]   ;;  %p810_p13 = por %p809_p12, %p808_p11 }
  0x48   :  { %266 = vmatprep.subr.bf16.mxu0 %v669_v11  ;;  %309 = vmatprep.subr.bf16.mxu1 %v693_v23  ;;  %v718_v49 = vld [vmem:[#allocation7 + $0x30] sm:$0xff]   ;;  %v719_v50 = vld [vmem:[#allocation7 + $0x78] sm:$0xff]  }
  0x49   :  { %v720_v51 = vld [vmem:[#allocation7 + $0x38] sm:$0xff]   ;;  %p811_p0 = pnand %p810_p13, %p804_p10 }
  0x4b   :  { %267 = vmatpush1.bf16.msra.mxu0 %v671_v15  ;;  %310 = vmatpush1.bf16.msra.mxu1 %v695_v25 }
  0x4c   :  { %268 = vmatprep.subr.bf16.mxu0 %v672_v16  ;;  %311 = vmatprep.subr.bf16.mxu1 %v696_v26 }
  0x4f   :  { %269 = vmatpush1.bf16.msra.mxu0 %v674_v19  ;;  %312 = vmatpush1.bf16.msra.mxu1 %v698_v30 }
  0x50   :  { %270 = vmatprep.subr.bf16.mxu0 %v675_v20  ;;  %313 = vmatprep.subr.bf16.mxu1 %v699_v31 }
  0x53   :  { %271 = vmatpush1.bf16.msra.mxu0 %v677_v21  ;;  %314 = vmatpush1.bf16.msra.mxu1 %v701_v33 }
  0x54   :  { %272 = vmatprep.subr.bf16.mxu0 %v681_v24  ;;  %315 = vmatprep.subr.bf16.mxu1 %v702_v34 }
  0x57   :  { %273 = vmatpush1.bf16.msra.mxu0 %v683_v27  ;;  %316 = vmatpush1.bf16.msra.mxu1 %v704_v35 }
  0x58   :  { %623 = vmatprep.subr.bf16.mxu0 %v705_v36 }
  0x5a   :  { %291 = vmatmul.mubr.bf16.vlgmr.msra.gmra.mrb[0].mxu0 %v65_v32  ;;  %334 = vmatmul.mubr.bf16.vlgmr.msra.gmra.mrb[0].mxu1 %v65_v32 }
  0x5b   :  { %624 = vmatpush3.bf16.msra.mxu0 %v706_v37 }
  0x5c   :  { %625 = vmatprep.subr.bf16.mxu0 %v707_v38 }
  0x5f   :  { %626 = vmatpush3.bf16.msra.mxu0 %v708_v39 }
  0x60   :  { %627 = vmatprep.subr.bf16.mxu0 %v709_v40 }
  0x63   :  { %628 = vmatpush3.bf16.msra.mxu0 %v710_v41 }
  0x64   :  { %629 = vmatprep.subr.bf16.mxu0 %v711_v42 }
  0x67   :  { %630 = vmatpush3.bf16.msra.mxu0 %v712_v43 }
  0x68   :  { %631 = vmatprep.subr.bf16.mxu0 %v713_v44 }
  0x6b   :  { %632 = vmatpush3.bf16.msra.mxu0 %v714_v45 }
  0x6c   :  { %633 = vmatprep.subr.bf16.mxu0 %v715_v46 }
  0x6f   :  { %634 = vmatpush3.bf16.msra.mxu0 %v716_v47 }
  0x70   :  { %635 = vmatprep.subr.bf16.mxu0 %v717_v48 }
  0x73   :  { %636 = vmatpush3.bf16.msra.mxu0 %v718_v49 }
  0x74   :  { %637 = vmatprep.subr.bf16.mxu0 %v719_v50 }
  0x77   :  { %638 = vmatpush3.bf16.msra.mxu0 %v720_v51 }
 0x12d   :  { %v292_v52 = vpop.f32.mrb[0].mxu0  ;;  %v335_v60 = vpop.f32.mrb[0].mxu1 }
 0x12e   :  { %v603_v53 = vmul.f32 -1.442695, %v292_v52  ;;  %v294_v54 = vpop.f32.mrb[1].mxu0  ;;  %v337_v61 = vpop.f32.mrb[1].mxu1 }
 0x12f   :  { %v604_v55 = vmul.f32 -1.442695, %v294_v54  ;;  %v296_v56 = vpop.f32.mrb[2].mxu0  ;;  %v339_v62 = vpop.f32.mrb[2].mxu1 }
 0x130   :  { %721 = vpow2.f32 %v603_v53  ;;  %v605_v57 = vmul.f32 -1.442695, %v296_v56  ;;  %v298_v58 = vpop.f32.mrb[3].mxu0  ;;  %v341_v0 = vpop.f32.mrb[3].mxu1 }
 0x131   :  { %723 = vpow2.f32 %v604_v55  ;;  %v606_v59 = vmul.f32 -1.442695, %v298_v58 }
 0x132   :  { %725 = vpow2.f32 %v605_v57 }
 0x133   :  { %727 = vpow2.f32 %v606_v59 }
 0x13a   :  { %v722_v63 = vpop.eup %721 }
 0x13b   :  { %v724_v1 = vpop.eup %723  ;;  %v356_v2 = vadd.f32 1.0, %v722_v63 }
 0x13c   :  { %v726_v3 = vpop.eup %725  ;;  %v357_v4 = vadd.f32 1.0, %v724_v1 }
 0x13d   :  { %v728_v5 = vpop.eup %727  ;;  %729 = vrcp.f32 %v356_v2  ;;  %v358_v6 = vadd.f32 1.0, %v726_v3 }
 0x13e   :  { %731 = vrcp.f32 %v357_v4  ;;  %v359_v7 = vadd.f32 1.0, %v728_v5 }
 0x13f   :  { %733 = vrcp.f32 %v358_v6 }
 0x140   :  { %735 = vrcp.f32 %v359_v7 }
 0x147   :  { %v730_v8 = vpop.eup %729 }
 0x148   :  { %v732_v9 = vpop.eup %731  ;;  %v368_v10 = vmul.f32 %v730_v8, %v292_v52 }
 0x149   :  { %v734_v11 = vpop.eup %733  ;;  %v369_v12 = vmul.f32 %v732_v9, %v294_v54 }
 0x14a   :  { %v736_v13 = vpop.eup %735  ;;  %v370_v14 = vmul.f32 %v734_v11, %v296_v56  ;;  %v372_v15 = vmul.f32 %v368_v10, %v335_v60 }
 0x14b   :  { %v371_v16 = vmul.f32 %v736_v13, %v298_v58  ;;  %v373_v17 = vmul.f32 %v369_v12, %v337_v61 }
 0x14c   :  { %v374_v18 = vmul.f32 %v370_v14, %v339_v62 }
 0x14d   :  { %v375_v19 = vmul.f32 %v371_v16, %v341_v0 }
 0x14e   :  { %v378_v20 = vpack.c.bf16 %v374_v18, %v372_v15 }
 0x14f   :  { %v379_v21 = vpack.c.bf16 %v375_v19, %v373_v17 }
 0x151   :  { %540 = vmatprep.mubr.bf16.mxu0 %v379_v21 }
 0x152   :  { %541 = vmatmul.mubr.bf16.vlgmr.msra.gmra.mrb[4].mxu0 %v378_v20 }
 0x225   :  { %v639_v22 = vpop.f32.mrb[4].mxu0 }
 0x226   :  { %v640_v23 = vpop.f32.mrb[5].mxu0 }
 0x227   :  { %v641_v24 = vadd.f32 %v640_v23, %v639_v22  ;;  %v642_v25 = vpop.f32.mrb[6].mxu0 }
 0x228   :  { %v643_v26 = vpop.f32.mrb[7].mxu0 }
 0x229   :  { %v644_v27 = vadd.f32 %v643_v26, %v642_v25  ;;  %551 = vst [vmem:[#allocation8] sm:$0xff] %v641_v24 }
 0x22b   :  { %552 = vst [vmem:[#allocation8 + $0x8] sm:$0xff] %v644_v27 }
 0x22c   :  { %814 = shalt.err (!%p811_p0)
}
 0x22d   :  { %s815_s29 = scalar_lea.hbm %s919_s3, 256 }
 0x22e   :  { %p816_p1 = scmp.ne.s32.totalorder %s919_s3, %s815_s29  ;;  %p819_p2 = scmp.lt.u32.totalorder %s815_s29, %s919_s3 }
 0x230   :  { %p821_p3 = pnand %p819_p2, %p816_p1 }
 0x232   :  { %824 = shalt.err (!%p821_p3)
}
 0x233   :  { %564 = dma.vmem_to_hbm [thread:$0]  %s559_s25, 256, %s919_s3, [#allocation4], %s835_s1, %s835_s1, %s836_s9  }
 0x234   :  { %829 = dma.done.wait [#allocation4], 256  }
 0x235   :  { %830 = vsyncadd [#allocation4], 4294967040 }
 0x236   :  { %568 = vsyncpa [#allocation3], 1 }
 0x237   :  { %569 = vsyncpa [#allocation6], 1 }
 0x238   :  { %570 = vsyncpa [#allocation4], 1 }

</bundles_post_ra>
